<compile_context>
chip_gen: v7x
topology: tpu7x:2x2x1
jax: 0.10.0
libtpu: 0.0.40
codegen_flags: <defaults>
</compile_context>

<pallas_src>
import functools

import jax
import jax.numpy as jnp
import numpy as np
from jax.experimental import pallas as pl
from jax.experimental.pallas import tpu as pltpu


def _onsite_kernel(x_ref, w1_ref, w2_ref, o_ref, y_ref, *, n, f):
    # x_ref : [N, TB]    one batch tile, batch on lanes
    # w1_ref: [F, N*N]   row k, col (i*N + j) holds W1[i, j, k] / N   (1/N folded in)
    # w2_ref: [F, F]     W2 / F                                        (1/F folded in)
    # o_ref : [1, TB]    lane-dense output
    # y_ref : [N*N, TB]  VMEM scratch for the outer-product slab
    x = x_ref[...]                                   # [N, TB] f32

    # ---- layer 0: TensorSquare(irreps_in -> feature_irreps), scalars only ----
    # Build y[i*N+j, b] = x[i,b] * x[j,b] with N sublane-broadcast multiplies
    # (static unroll, N = 8; each slice is 8-sublane aligned), then ONE fused
    # [F, N*N] x [N*N, TB] MXU matmul instead of N tiny matmuls.
    for i in range(n):
        y_ref[i * n:(i + 1) * n, :] = x[i:i + 1, :] * x          # [N, TB] rows
    h = jnp.dot(w1_ref[...], y_ref[...],
                preferred_element_type=jnp.float32)              # [F, TB] MXU

    # ---- layer 1: nn.Activation([silu]) (Gate degenerates: no l>0 irreps) ----
    h = h * jax.nn.sigmoid(h)                                    # SiLU (EUP sigmoid)

    # ---- layer 2: TensorSquare(feature_irreps -> '0e') ----
    # z[b] = sum_i h[i, b] * (sum_j (W2[j, i]/F) * h[j, b])
    g = jnp.dot(w2_ref[...], h, preferred_element_type=jnp.float32)   # [F, TB] MXU
    z = jnp.sum(g * h, axis=0, keepdims=True)                    # [1, TB] sublane reduce

    o_ref[...] = z.astype(o_ref.dtype)                           # lane-dense store


def prepare_onsite_params(w1, w2):
    """One-time parameter prep (hoisted out of the per-call path).

    w1: [N, N, F] TensorSquare weights (symmetric in i,j), w2: [F, F].
    Returns (w1_flat [F, N*N] with 1/N folded in, w2_s [F, F] with 1/F folded in).
    """
    N, _, F = w1.shape
    w1_flat = (jnp.transpose(jnp.asarray(w1, jnp.float32), (2, 0, 1))
               .reshape(F, N * N) / N)
    w2_s = jnp.asarray(w2, jnp.float32) / F
    return w1_flat, w2_s


def onsite_model_forward(site_t, w1_flat, w2_s, *, num_tiles=1):
    """Pallas forward pass.

    site_t : [N, B] f32 activations already in batch-on-lanes layout (transpose is the
             producer's job, not a per-call op).
    num_tiles: 1 for v5e/v6e (single TC => single grid step is optimal),
               2 for v7x (one "parallel" tile per TensorCore).
    Returns [B, 1].
    """
    N, B = site_t.shape
    F = w2_s.shape[0]
    assert w1_flat.shape == (F, N * N)
    assert B % num_tiles == 0
    tile_b = B // num_tiles
    assert num_tiles == 1 or tile_b % 128 == 0

    kernel = functools.partial(_onsite_kernel, n=N, f=F)
    out = pl.pallas_call(
        kernel,
        out_shape=jax.ShapeDtypeStruct((1, B), jnp.float32),
        grid=(num_tiles,),
        in_specs=[
            pl.BlockSpec((N, tile_b), lambda b: (0, b)),
            pl.BlockSpec((F, N * N), lambda b: (0, 0)),   # resident weights
            pl.BlockSpec((F, F), lambda b: (0, 0)),       # resident weights
        ],
        out_specs=pl.BlockSpec((1, tile_b), lambda b: (0, b)),
        scratch_shapes=[pltpu.VMEM((N * N, tile_b), jnp.float32)],
        compiler_params=pltpu.CompilerParams(dimension_semantics=("parallel",)),
    )(site_t, w1_flat, w2_s)
    return out.reshape(B, 1)


def _reference_forward(site, w1, w2):
    """Pure-JAX reference of the same math (for a correctness check). site: [B, N]."""
    N = site.shape[1]
    F = w2.shape[0]
    h = jnp.einsum("bi,bj,ijk->bk", site, site, w1) / N
    h = h * jax.nn.sigmoid(h)
    z = jnp.einsum("bi,bj,ij->b", h, h, w2)[:, None] / F
    return z


if __name__ == "__main__":
    B, N, F = 256, 8, 16  # batch of sites, input scalar irreps, feature scalar irreps

    key = jax.random.PRNGKey(0)
    k_x, k_w1, k_w2 = jax.random.split(key, 3)

    # deterministic synthetic parameters (TensorSquare weights, symmetric in (i, j))
    site = jax.random.normal(k_x, (B, N), dtype=jnp.float32)
    w1_raw = jax.random.normal(k_w1, (N, N, F), dtype=jnp.float32)
    w1 = 0.5 * (w1_raw + jnp.transpose(w1_raw, (1, 0, 2)))
    w2_raw = jax.random.normal(k_w2, (F, F), dtype=jnp.float32)
    w2 = 0.5 * (w2_raw + w2_raw.T)

    # One-time prep: fold normalization into weights, put activations batch-on-lanes.
    w1_flat, w2_s = prepare_onsite_params(w1, w2)
    site_t = jnp.asarray(site.T, jnp.float32)   # producer-side layout; done once

    out = onsite_model_forward(site_t, w1_flat, w2_s)   # num_tiles=2 on v7x
    out = jax.block_until_ready(out)

    ref = jax.block_until_ready(_reference_forward(site, w1, w2))
    np.testing.assert_allclose(np.asarray(out), np.asarray(ref), rtol=1e-4, atol=1e-4)

    print("KERNEL_OK")
</pallas_src>

<mosaic_0001>
module attributes {stable_mosaic.version = 11 : i64} {
  func.func @_onsite_kernel(%arg0: i32, %arg1: memref<8x256xf32, #tpu.memory_space<vmem>>, %arg2: memref<16x64xf32, #tpu.memory_space<vmem>>, %arg3: memref<16x16xf32, #tpu.memory_space<vmem>>, %arg4: memref<1x256xf32, #tpu.memory_space<vmem>>, %arg5: memref<64x256xf32, #tpu.memory_space<vmem>>) attributes {dimension_semantics = [#tpu.dimension_semantics<parallel>], iteration_bounds = array<i64: 1>, scalar_prefetch = 0 : i64, scratch_operands = 1 : i64, tpu.core_type = #tpu.core_type<tc>, window_params = [{transform_indices = @transform_0, window_bounds = array<i64: 8, 256>}, {pipeline_mode = #tpu.pipeline_mode<synchronous>, transform_indices = @transform_1, window_bounds = array<i64: 16, 64>}, {pipeline_mode = #tpu.pipeline_mode<synchronous>, transform_indices = @transform_2, window_bounds = array<i64: 16, 16>}, {transform_indices = @transform_3, window_bounds = array<i64: 1, 256>}]} {
    %c0 = arith.constant 0 : index
    %c0_0 = arith.constant 0 : index
    %0 = vector.load %arg1[%c0, %c0_0] : memref<8x256xf32, #tpu.memory_space<vmem>>, vector<8x256xf32>
    %1 = vector.extract_strided_slice %0 {offsets = [0, 0], sizes = [1, 256], strides = [1, 1]} : vector<8x256xf32> to vector<1x256xf32>
    %2 = vector.broadcast %1 : vector<1x256xf32> to vector<8x256xf32>
    %3 = arith.mulf %2, %0 : vector<8x256xf32>
    %c0_1 = arith.constant 0 : index
    %c0_2 = arith.constant 0 : index
    %4 = vector.load %arg5[%c0_1, %c0_2] : memref<64x256xf32, #tpu.memory_space<vmem>>, vector<8x256xf32>
    tpu.vector_store %arg5[%c0_1, %c0_2], %3 {strides = array<i32>} : memref<64x256xf32, #tpu.memory_space<vmem>>, vector<8x256xf32>,
    %5 = vector.extract_strided_slice %0 {offsets = [1, 0], sizes = [1, 256], strides = [1, 1]} : vector<8x256xf32> to vector<1x256xf32>
    %6 = vector.broadcast %5 : vector<1x256xf32> to vector<8x256xf32>
    %7 = arith.mulf %6, %0 : vector<8x256xf32>
    %c8 = arith.constant 8 : index
    %c0_3 = arith.constant 0 : index
    %8 = vector.load %arg5[%c8, %c0_3] : memref<64x256xf32, #tpu.memory_space<vmem>>, vector<8x256xf32>
    tpu.vector_store %arg5[%c8, %c0_3], %7 {strides = array<i32>} : memref<64x256xf32, #tpu.memory_space<vmem>>, vector<8x256xf32>,
    %9 = vector.extract_strided_slice %0 {offsets = [2, 0], sizes = [1, 256], strides = [1, 1]} : vector<8x256xf32> to vector<1x256xf32>
    %10 = vector.broadcast %9 : vector<1x256xf32> to vector<8x256xf32>
    %11 = arith.mulf %10, %0 : vector<8x256xf32>
    %c16 = arith.constant 16 : index
    %c0_4 = arith.constant 0 : index
    %12 = vector.load %arg5[%c16, %c0_4] : memref<64x256xf32, #tpu.memory_space<vmem>>, vector<8x256xf32>
    tpu.vector_store %arg5[%c16, %c0_4], %11 {strides = array<i32>} : memref<64x256xf32, #tpu.memory_space<vmem>>, vector<8x256xf32>,
    %13 = vector.extract_strided_slice %0 {offsets = [3, 0], sizes = [1, 256], strides = [1, 1]} : vector<8x256xf32> to vector<1x256xf32>
    %14 = vector.broadcast %13 : vector<1x256xf32> to vector<8x256xf32>
    %15 = arith.mulf %14, %0 : vector<8x256xf32>
    %c24 = arith.constant 24 : index
    %c0_5 = arith.constant 0 : index
    %16 = vector.load %arg5[%c24, %c0_5] : memref<64x256xf32, #tpu.memory_space<vmem>>, vector<8x256xf32>
    tpu.vector_store %arg5[%c24, %c0_5], %15 {strides = array<i32>} : memref<64x256xf32, #tpu.memory_space<vmem>>, vector<8x256xf32>,
    %17 = vector.extract_strided_slice %0 {offsets = [4, 0], sizes = [1, 256], strides = [1, 1]} : vector<8x256xf32> to vector<1x256xf32>
    %18 = vector.broadcast %17 : vector<1x256xf32> to vector<8x256xf32>
    %19 = arith.mulf %18, %0 : vector<8x256xf32>
    %c32 = arith.constant 32 : index
    %c0_6 = arith.constant 0 : index
    %20 = vector.load %arg5[%c32, %c0_6] : memref<64x256xf32, #tpu.memory_space<vmem>>, vector<8x256xf32>
    tpu.vector_store %arg5[%c32, %c0_6], %19 {strides = array<i32>} : memref<64x256xf32, #tpu.memory_space<vmem>>, vector<8x256xf32>,
    %21 = vector.extract_strided_slice %0 {offsets = [5, 0], sizes = [1, 256], strides = [1, 1]} : vector<8x256xf32> to vector<1x256xf32>
    %22 = vector.broadcast %21 : vector<1x256xf32> to vector<8x256xf32>
    %23 = arith.mulf %22, %0 : vector<8x256xf32>
    %c40 = arith.constant 40 : index
    %c0_7 = arith.constant 0 : index
    %24 = vector.load %arg5[%c40, %c0_7] : memref<64x256xf32, #tpu.memory_space<vmem>>, vector<8x256xf32>
    tpu.vector_store %arg5[%c40, %c0_7], %23 {strides = array<i32>} : memref<64x256xf32, #tpu.memory_space<vmem>>, vector<8x256xf32>,
    %25 = vector.extract_strided_slice %0 {offsets = [6, 0], sizes = [1, 256], strides = [1, 1]} : vector<8x256xf32> to vector<1x256xf32>
    %26 = vector.broadcast %25 : vector<1x256xf32> to vector<8x256xf32>
    %27 = arith.mulf %26, %0 : vector<8x256xf32>
    %c48 = arith.constant 48 : index
    %c0_8 = arith.constant 0 : index
    %28 = vector.load %arg5[%c48, %c0_8] : memref<64x256xf32, #tpu.memory_space<vmem>>, vector<8x256xf32>
    tpu.vector_store %arg5[%c48, %c0_8], %27 {strides = array<i32>} : memref<64x256xf32, #tpu.memory_space<vmem>>, vector<8x256xf32>,
    %29 = vector.extract_strided_slice %0 {offsets = [7, 0], sizes = [1, 256], strides = [1, 1]} : vector<8x256xf32> to vector<1x256xf32>
    %30 = vector.broadcast %29 : vector<1x256xf32> to vector<8x256xf32>
    %31 = arith.mulf %30, %0 : vector<8x256xf32>
    %c56 = arith.constant 56 : index
    %c0_9 = arith.constant 0 : index
    %32 = vector.load %arg5[%c56, %c0_9] : memref<64x256xf32, #tpu.memory_space<vmem>>, vector<8x256xf32>
    tpu.vector_store %arg5[%c56, %c0_9], %31 {strides = array<i32>} : memref<64x256xf32, #tpu.memory_space<vmem>>, vector<8x256xf32>,
    %c0_10 = arith.constant 0 : index
    %c0_11 = arith.constant 0 : index
    %33 = vector.load %arg2[%c0_10, %c0_11] : memref<16x64xf32, #tpu.memory_space<vmem>>, vector<16x64xf32>
    %c0_12 = arith.constant 0 : index
    %c0_13 = arith.constant 0 : index
    %34 = vector.load %arg5[%c0_12, %c0_13] : memref<64x256xf32, #tpu.memory_space<vmem>>, vector<64x256xf32>
    %cst = arith.constant dense<0.000000e+00> : vector<16x256xf32>
    %35 = tpu.matmul %33, %34, %cst {dimension_numbers = #tpu.dot_dimension_numbers<[1], [0], [0], [1], [0, 0, 1, 1], [], []>} : vector<16x64xf32>, vector<64x256xf32>, vector<16x256xf32> -> vector<16x256xf32>
    %36 = arith.negf %35 : vector<16x256xf32>
    %37 = math.exp %36 : vector<16x256xf32>
    %cst_14 = arith.constant 1.000000e+00 : f32
    %38 = vector.broadcast %cst_14 : f32 to vector<16x256xf32>
    %39 = arith.addf %38, %37 : vector<16x256xf32>
    %40 = arith.divf %38, %39 : vector<16x256xf32>
    %41 = arith.mulf %35, %40 : vector<16x256xf32>
    %c0_15 = arith.constant 0 : index
    %c0_16 = arith.constant 0 : index
    %42 = vector.load %arg3[%c0_15, %c0_16] : memref<16x16xf32, #tpu.memory_space<vmem>>, vector<16x16xf32>
    %cst_17 = arith.constant dense<0.000000e+00> : vector<16x256xf32>
    %43 = tpu.matmul %42, %41, %cst_17 {dimension_numbers = #tpu.dot_dimension_numbers<[1], [0], [0], [1], [0, 0, 1, 1], [], []>} : vector<16x16xf32>, vector<16x256xf32>, vector<16x256xf32> -> vector<16x256xf32>
    %44 = arith.mulf %43, %41 : vector<16x256xf32>
    %cst_18 = arith.constant dense<0.000000e+00> : vector<256xf32>
    %45 = vector.multi_reduction <add>, %44, %cst_18 [0] : vector<16x256xf32> to vector<256xf32>
    %46 = vector.shape_cast %45 : vector<256xf32> to vector<1x256xf32>
    %c0_19 = arith.constant 0 : index
    %c0_20 = arith.constant 0 : index
    %47 = vector.load %arg4[%c0_19, %c0_20] : memref<1x256xf32, #tpu.memory_space<vmem>>, vector<1x256xf32>
    tpu.vector_store %arg4[%c0_19, %c0_20], %46 {strides = array<i32>} : memref<1x256xf32, #tpu.memory_space<vmem>>, vector<1x256xf32>,
    return
  }
  func.func @transform_0(%arg0: i32) -> (i32, i32) {
    %c0_i32 = arith.constant 0 : i32
    %c0_i32_0 = arith.constant 0 : i32
    return %c0_i32, %arg0 : i32, i32
  }
  func.func @transform_1(%arg0: i32) -> (i32, i32) {
    %c0_i32 = arith.constant 0 : i32
    %c0_i32_0 = arith.constant 0 : i32
    %c0_i32_1 = arith.constant 0 : i32
    return %c0_i32, %c0_i32_0 : i32, i32
  }
  func.func @transform_2(%arg0: i32) -> (i32, i32) {
    %c0_i32 = arith.constant 0 : i32
    %c0_i32_0 = arith.constant 0 : i32
    %c0_i32_1 = arith.constant 0 : i32
    return %c0_i32, %c0_i32_0 : i32, i32
  }
  func.func @transform_3(%arg0: i32) -> (i32, i32) {
    %c0_i32 = arith.constant 0 : i32
    %c0_i32_0 = arith.constant 0 : i32
    return %c0_i32, %arg0 : i32, i32
  }
}

</mosaic_0001>

<bundles_post_ra>
// kernel: tpu_custom_call.1
= control target key start
LH: loop header
LB: loop body
LE: loop exit
PB: predicated region body
PF: predicated region fallthrough
CT: control target
= control target key end

     0   :  { %8 = vsyncpa [#allocation4], 0  ;;  %s670_s0 = inlined_call_operand.hbm [shape: f32[8,256], index: 0, kind: input, shape index: {}]   ;;  %s671_s1 = inlined_call_operand.hbm [shape: f32[16,64], index: 1, kind: input, shape index: {}]   ;;  %s672_s2 = inlined_call_operand.hbm [shape: f32[16,16], index: 2, kind: input, shape index: {}]   ;;  %s673_s3 = inlined_call_operand.hbm [shape: f32[1,256], index: 3, kind: output, shape index: {}]  }
   0x1   :  { %9 = vsyncpa [#allocation7], 0 }
   0x2   :  { %10 = vsyncpa [#allocation5], 0  ;;  %s571_s12 = smov [#allocation6]   ;;  %s477_s16 = scalar_lea.hbm %s671_s1, 256 }
   0x3   :  { %s26_s13 = sshll.u32 %s571_s12, 4  ;;  %p478_p0 = scmp.ne.s32.totalorder %s671_s1, %s477_s16  ;;  %s27_s13 = int_to_ptr.vmem [resolvable:$true] %s26_s13 }
   0x4   :  { %p481_p1 = scmp.lt.u32.totalorder %s477_s16, %s671_s1 }
   0x6   :  { %p483_p2 = pnand %p481_p1, %p478_p0 }
   0x8   :  { %486 = shalt.err (!%p483_p2)
}
   0x9   :  { %s487_s21 = scalar_lea.vmem %s27_s13, 256  ;;  %p492_p4 = scmp.lt.s32.totalorder %s27_s13, %s27_s13 }
   0xa   :  { %p488_p3 = scmp.ne.s32.totalorder %s27_s13, %s487_s21  ;;  %p493_p5 = scmp.lt.s32.totalorder %s487_s21, %s487_s21 }
   0xc   :  { %p494_p6 = por %p493_p5, %p492_p4 }
   0xe   :  { %p495_p7 = pnand %p494_p6, %p488_p3 }
  0x10   :  { %498 = shalt.err (!%p495_p7)
}
  0x11   :  { %s572_s22 = smov 128   ;;  %s573_s23 = smov 8  }
  0x12   :  { %32 = dma.hbm_to_vmem [thread:$0]  %s671_s1, 256, %s27_s13, [#allocation7], %s572_s22, %s572_s22, %s573_s23  }
  0x13   :  { %s574_s26 = smov [#allocation3]   ;;  %s575_s28 = smov [#allocation8]  }
  0x14   :  { %s17_s27 = sshll.u32 %s574_s26, 4  ;;  %s38_s29 = sshll.u32 %s575_s28, 4  ;;  %s18_s27 = int_to_ptr.vmem [resolvable:$true] %s17_s27  ;;  %s39_s29 = int_to_ptr.vmem [resolvable:$true] %s38_s29 }
  0x15   :  { %s499_s5 = scalar_lea.hbm %s670_s0, 256 }
  0x16   :  { %p500_p8 = scmp.ne.s32.totalorder %s670_s0, %s499_s5  ;;  %p503_p9 = scmp.lt.u32.totalorder %s499_s5, %s670_s0 }
  0x18   :  { %p505_p10 = pnand %p503_p9, %p500_p8 }
  0x1a   :  { %508 = shalt.err (!%p505_p10)
}
  0x1b   :  { %s509_s1 = scalar_lea.vmem %s18_s27, 256  ;;  %p514_p12 = scmp.lt.s32.totalorder %s18_s27, %s18_s27 }
  0x1c   :  { %p510_p11 = scmp.ne.s32.totalorder %s18_s27, %s509_s1  ;;  %p515_p13 = scmp.lt.s32.totalorder %s509_s1, %s509_s1 }
  0x1e   :  { %p516_p0 = por %p515_p13, %p514_p12 }
  0x20   :  { %p517_p1 = pnand %p516_p0, %p510_p11 }
  0x22   :  { %520 = shalt.err (!%p517_p1)
}
  0x23   :  { %20 = dma.hbm_to_vmem [thread:$0]  %s670_s0, 256, %s18_s27, [#allocation4]  }
  0x24   :  { %s521_s14 = scalar_lea.hbm %s672_s2, 256 }
  0x25   :  { %p522_p2 = scmp.ne.s32.totalorder %s672_s2, %s521_s14  ;;  %p525_p3 = scmp.lt.u32.totalorder %s521_s14, %s672_s2 }
  0x27   :  { %p527_p4 = pnand %p525_p3, %p522_p2 }
  0x29   :  { %530 = shalt.err (!%p527_p4)
}
  0x2a   :  { %s531_s19 = scalar_lea.vmem %s39_s29, 256  ;;  %p536_p6 = scmp.lt.s32.totalorder %s39_s29, %s39_s29 }
  0x2b   :  { %p532_p5 = scmp.ne.s32.totalorder %s39_s29, %s531_s19  ;;  %p537_p7 = scmp.lt.s32.totalorder %s531_s19, %s531_s19 }
  0x2d   :  { %p538_p8 = por %p537_p7, %p536_p6 }
  0x2f   :  { %p539_p9 = pnand %p538_p8, %p532_p5 }
  0x31   :  { %542 = shalt.err (!%p539_p9)
}
  0x32   :  { %44 = dma.hbm_to_vmem [thread:$0]  %s672_s2, 256, %s39_s29, [#allocation7], %s572_s22, %s572_s22, %s573_s23  }
  0x33   :  { %565 = dma.done.wait [#allocation4], 256  }
  0x34   :  { %566 = vsyncadd [#allocation4], 4294967040 }
  0x35   :  { %567 = dma.done.wait [#allocation7], 512  }
  0x36   :  { %568 = vsyncadd [#allocation7], 4294966784  ;;  %v56_v0 = vlaneseq  ;;  %v576_v1 = vmov 0.0   ;;  %v55_v7 = vld [vmem:[#allocation3 + $0x8] sm:$0xff]  ;;  %v54_v8 = vld [vmem:[#allocation3] sm:$0xff]  ;;  %vm170_vm0 = vcmask 523264  }
  0x37   :  { %241 = vmatprep.mubr.f32.mxu0 %v576_v1  ;;  %355 = vmatprep.mubr.f32.mxu1 %v576_v1  ;;  %v152_v53 = vld [vmem:[#allocation6] sm:$0xff]  ;;  %v153_v54 = vld [vmem:[#allocation6 + $0x8] sm:$0xff]  ;;  %vm284_vm1 = vcmask 130048   ;;  %s578_s2 = smov [#allocation9]  }
  0x38   :  { %v644_v2 = vshrl.u32 %v56_v0, 7  ;;  %s415_s21 = sshll.u32 %s578_s2, 4  ;;  %vm406_vm2 = vcmp.lt.s32.totalorder %v56_v0, 256  ;;  %s416_s21 = int_to_ptr.vmem [resolvable:$true] %s415_s21 }
  0x39   :  { %s543_s22 = scalar_lea.vmem %s416_s21, 32  ;;  %p548_p11 = scmp.lt.s32.totalorder %s416_s21, %s416_s21 }
  0x3a   :  { %v58_v3 = vsub.s32 0, %v644_v2  ;;  %v70_v4 = vsub.s32 1, %v644_v2  ;;  %v82_v5 = vsub.s32 2, %v644_v2  ;;  %v94_v6 = vsub.s32 3, %v644_v2  ;;  %p544_p10 = scmp.ne.s32.totalorder %s416_s21, %s543_s22  ;;  %p549_p12 = scmp.lt.s32.totalorder %s543_s22, %s543_s22 }
  0x3b   :  { %v106_v9 = vsub.s32 4, %v644_v2  ;;  %v118_v10 = vsub.s32 5, %v644_v2  ;;  %v130_v11 = vsub.s32 6, %v644_v2  ;;  %v142_v12 = vsub.s32 7, %v644_v2 }
  0x3c   :  { %v63_v13 = vrot.slane %v55_v7, %v58_v3  ;;  %v75_v14 = vrot.slane %v55_v7, %v70_v4  ;;  %v59_v15 = vrot.slane %v54_v8, %v58_v3  ;;  %v71_v16 = vrot.slane %v54_v8, %v70_v4  ;;  %p550_p13 = por %p549_p12, %p548_p11 }
  0x3d   :  { %v87_v17 = vrot.slane %v55_v7, %v82_v5  ;;  %v99_v18 = vrot.slane %v55_v7, %v94_v6  ;;  %v83_v19 = vrot.slane %v54_v8, %v82_v5  ;;  %v95_v20 = vrot.slane %v54_v8, %v94_v6 }
  0x3e   :  { %v65_v21 = vmul.f32 %v63_v13, %v55_v7  ;;  %v77_v22 = vmul.f32 %v75_v14, %v55_v7  ;;  %v64_v23 = vmul.f32 %v59_v15, %v54_v8  ;;  %v76_v24 = vmul.f32 %v71_v16, %v54_v8  ;;  %p551_p0 = pnand %p550_p13, %p544_p10 }
  0x3f   :  { %v89_v25 = vmul.f32 %v87_v17, %v55_v7  ;;  %v101_v26 = vmul.f32 %v99_v18, %v55_v7  ;;  %v88_v27 = vmul.f32 %v83_v19, %v54_v8  ;;  %v100_v28 = vmul.f32 %v95_v20, %v54_v8  ;;  %v282_v20 = vld [vmem:[#allocation8] sm:$0xff] }
  0x40   :  { %v433_v29 = vpack.c.bf16 %v77_v22, %v65_v21  ;;  %v435_v30 = vpack.c.bf16 %v76_v24, %v64_v23  ;;  %v111_v31 = vrot.slane %v55_v7, %v106_v9  ;;  %v123_v32 = vrot.slane %v55_v7, %v118_v10  ;;  %v283_v21 = vld [vmem:[#allocation8 + $0x8] sm:$0xff] }
  0x41   :  { %v437_v33 = vpack.c.bf16 %v101_v26, %v89_v25  ;;  %v439_v34 = vpack.c.bf16 %v100_v28, %v88_v27  ;;  %v107_v35 = vrot.slane %v54_v8, %v106_v9  ;;  %v119_v36 = vrot.slane %v54_v8, %v118_v10 }
  0x42   :  { %434 = vmatprep.subr.bf16.mxu0 %v433_v29  ;;  %v113_v37 = vmul.f32 %v111_v31, %v55_v7  ;;  %v125_v38 = vmul.f32 %v123_v32, %v55_v7  ;;  %v135_v39 = vrot.slane %v55_v7, %v130_v11  ;;  %v147_v40 = vrot.slane %v55_v7, %v142_v12 }
  0x43   :  { %436 = vmatpush1.bf16.msra.mxu0 %v435_v30  ;;  %v112_v41 = vmul.f32 %v107_v35, %v54_v8  ;;  %v124_v42 = vmul.f32 %v119_v36, %v54_v8  ;;  %v131_v43 = vrot.slane %v54_v8, %v130_v11  ;;  %v143_v44 = vrot.slane %v54_v8, %v142_v12 }
  0x44   :  { %438 = vmatprep.subr.bf16.mxu0 %v437_v33  ;;  %v441_v45 = vpack.c.bf16 %v125_v38, %v113_v37  ;;  %v137_v46 = vmul.f32 %v135_v39, %v55_v7  ;;  %v149_v47 = vmul.f32 %v147_v40, %v55_v7  ;;  %v577_v36 = vmov 1966171168  }
  0x45   :  { %v443_v48 = vpack.c.bf16 %v124_v42, %v112_v41  ;;  %v136_v49 = vmul.f32 %v131_v43, %v54_v8  ;;  %v148_v50 = vmul.f32 %v143_v44, %v54_v8  ;;  %v390_v37 = vunpack.c.l.s4 %v577_v36 }
  0x46   :  { %v445_v51 = vpack.c.bf16 %v149_v47, %v137_v46 }
  0x47   :  { %440 = vmatpush1.bf16.msra.mxu0 %v439_v34  ;;  %v447_v52 = vpack.c.bf16 %v148_v50, %v136_v49  ;;  %v391_v41 = vunpack.c.0.s8 %v390_v37 }
  0x48   :  { %442 = vmatprep.subr.bf16.mxu0 %v441_v45 }
  0x49   :  { %v394_v46 = vsub.s32 %v391_v41, %v644_v2 }
  0x4b   :  { %444 = vmatpush1.bf16.msra.mxu0 %v443_v48 }
  0x4c   :  { %446 = vmatprep.subr.bf16.mxu0 %v445_v51 }
  0x4f   :  { %448 = vmatpush1.bf16.msra.mxu0 %v447_v52 }
  0x52   :  { %425 = vmatmul.mubr.msk.f32.vlgmr.msra.gmra.mrb[0].mxu0 %vm170_vm0, %v152_v53 }
  0x53   :  { %247 = vmatprep.mubr.f32.mxu0 %v576_v1 }
  0x56   :  { %426 = vmatmul.mubr.msk.f32.gmra.mrb[2].mxu0 %vm170_vm0, %v153_v54 }
 0x125   :  { %v243_v55 = vpop.f32.mrb[0].mxu0 }
 0x126   :  { %v427_v56 = vmul.f32 -1.442695, %v243_v55  ;;  %v245_v57 = vpop.f32.mrb[1].mxu0 }
 0x127   :  { %v428_v58 = vmul.f32 -1.442695, %v245_v57 }
 0x128   :  { %461 = vpow2.f32 %v427_v56 }
 0x129   :  { %463 = vpow2.f32 %v428_v58  ;;  %v249_v59 = vpop.f32.mrb[2].mxu0 }
 0x12a   :  { %v429_v60 = vmul.f32 -1.442695, %v249_v59  ;;  %v251_v61 = vpop.f32.mrb[3].mxu0 }
 0x12b   :  { %v430_v62 = vmul.f32 -1.442695, %v251_v61 }
 0x12c   :  { %465 = vpow2.f32 %v429_v60 }
 0x12d   :  { %467 = vpow2.f32 %v430_v62 }
 0x132   :  { %v462_v63 = vpop.eup %461 }
 0x133   :  { %v464_v3 = vpop.eup %463  ;;  %v266_v4 = vadd.f32 1.0, %v462_v63 }
 0x134   :  { %v267_v5 = vadd.f32 1.0, %v464_v3 }
 0x135   :  { %469 = vrcp.f32 %v266_v4 }
 0x136   :  { %v466_v6 = vpop.eup %465  ;;  %471 = vrcp.f32 %v267_v5 }
 0x137   :  { %v468_v7 = vpop.eup %467  ;;  %v268_v8 = vadd.f32 1.0, %v466_v6 }
 0x138   :  { %v269_v9 = vadd.f32 1.0, %v468_v7 }
 0x139   :  { %473 = vrcp.f32 %v268_v8 }
 0x13a   :  { %475 = vrcp.f32 %v269_v9 }
 0x13f   :  { %v470_v10 = vpop.eup %469 }
 0x140   :  { %v472_v11 = vpop.eup %471  ;;  %v278_v17 = vmul.f32 %v470_v10, %v243_v55 }
 0x141   :  { %v279_v15 = vmul.f32 %v472_v11, %v245_v57 }
 0x143   :  { %v474_v12 = vpop.eup %473 }
 0x144   :  { %v476_v13 = vpop.eup %475  ;;  %v280_v14 = vmul.f32 %v474_v12, %v249_v59 }
 0x145   :  { %v281_v16 = vmul.f32 %v476_v13, %v251_v61 }
 0x146   :  { %v451_v19 = vpack.c.bf16 %v280_v14, %v278_v17 }
 0x147   :  { %v449_v18 = vpack.c.bf16 %v281_v16, %v279_v15 }
 0x149   :  { %450 = vmatprep.subr.bf16.mxu1 %v449_v18 }
 0x14a   :  { %452 = vmatpush1.bf16.msra.mxu1 %v451_v19 }
 0x14d   :  { %431 = vmatmul.mubr.msk.f32.vlgmr.msra.gmra.mrb[0].mxu1 %vm284_vm1, %v282_v20 }
 0x14e   :  { %361 = vmatprep.mubr.f32.mxu1 %v576_v1 }
 0x151   :  { %432 = vmatmul.mubr.msk.f32.gmra.mrb[2].mxu1 %vm284_vm1, %v283_v21 }
 0x220   :  { %v357_v22 = vpop.f32.mrb[0].mxu1 }
 0x221   :  { %v359_v23 = vpop.f32.mrb[1].mxu1  ;;  %v368_v25 = vmul.f32 %v357_v22, %v278_v17 }
 0x222   :  { %v369_v28 = vmul.f32 %v359_v23, %v279_v15 }
 0x224   :  { %v363_v24 = vpop.f32.mrb[2].mxu1 }
 0x225   :  { %v370_v26 = vmul.f32 %v363_v24, %v280_v14  ;;  %v365_v27 = vpop.f32.mrb[3].mxu1 }
 0x226   :  { %v371_v29 = vmul.f32 %v365_v27, %v281_v16 }
 0x227   :  { %v372_v30 = vadd.f32 %v370_v26, %v368_v25 }
 0x228   :  { %v379_v31 = vadd.f32 %v371_v29, %v369_v28 }
 0x229   :  { %v373_v32 = vrot.slane %v372_v30, 4 }
 0x22a   :  { %v380_v33 = vrot.slane %v379_v31, 4 }
 0x22b   :  { %v374_v34 = vadd.f32 %v373_v32, %v372_v30 }
 0x22c   :  { %v381_v35 = vadd.f32 %v380_v33, %v379_v31 }
 0x22d   :  { %v375_v38 = vrot.slane %v374_v34, 2 }
 0x22e   :  { %v382_v1 = vrot.slane %v381_v35, 2 }
 0x22f   :  { %v376_v39 = vadd.f32 %v375_v38, %v374_v34 }
 0x230   :  { %v383_v40 = vadd.f32 %v382_v1, %v381_v35 }
 0x231   :  { %v377_v42 = vrot.slane %v376_v39, 1 }
 0x232   :  { %v384_v43 = vrot.slane %v383_v40, 1 }
 0x233   :  { %v378_v44 = vadd.f32 %v377_v42, %v376_v39 }
 0x234   :  { %v385_v45 = vadd.f32 %v384_v43, %v383_v40 }
 0x236   :  { %v388_v47 = vcombine.low %v378_v44, %v385_v45 }
 0x238   :  { %v395_v48 = vrot.slane %v388_v47, %v394_v46 }
 0x23a   :  { %v402_v49 = vrot.slane %v395_v48, %v394_v46 }
 0x23c   :  { %408 = vst.msk [vmem:[#allocation9] sm:$0x3] %vm406_vm2, %v402_v49 }
 0x23d   :  { %554 = shalt.err (!%p551_p0)
}
 0x23e   :  { %s555_s25 = scalar_lea.hbm %s673_s3, 32 }
 0x23f   :  { %p556_p1 = scmp.ne.s32.totalorder %s673_s3, %s555_s25  ;;  %p559_p2 = scmp.lt.u32.totalorder %s555_s25, %s673_s3 }
 0x241   :  { %p561_p3 = pnand %p559_p2, %p556_p1 }
 0x243   :  { %564 = shalt.err (!%p561_p3)
}
 0x244   :  { %418 = dma.vmem_to_hbm [thread:$0]  %s416_s21, 32, %s673_s3, [#allocation5]  }
 0x245   :  { %569 = dma.done.wait [#allocation5], 32  }
 0x246   :  { %570 = vsyncadd [#allocation5], 4294967264 }
 0x247   :  { %422 = vsyncpa [#allocation4], 1 }
 0x248   :  { %423 = vsyncpa [#allocation7], 1 }
 0x249   :  { %424 = vsyncpa [#allocation5], 1 }

</bundles_post_ra>
